<compile_context>
chip_gen: v5e
topology: v5e:2x2
jax: 0.10.0
libtpu: 0.0.40
codegen_flags: <defaults>
</compile_context>

<pallas_src>
import functools

import jax
import jax.numpy as jnp
from jax.experimental import pallas as pl
from jax.experimental.pallas import tpu as pltpu


LEAKY_SLOPE = 0.2
PIXELNORM_EPS = 1e-8
DEFAULT_TILE_K = 8192       # bf16 weight tiles ~4 MiB/step, ~8 MiB double-buffered


def _round_up(x, m):
    return ((x + m - 1) // m) * m


# ------------------------------------------------------------------ kernel math helpers

def _mapping_f_math(z, mf_w_ref, mf_b_ref, mapping_layers):
    """pixelnorm(z) followed by `mapping_layers` LeakyReLU FC layers (bf16 weights)."""
    h = z * jax.lax.rsqrt(jnp.mean(z * z, axis=-1, keepdims=True) + PIXELNORM_EPS)
    for i in range(mapping_layers):                       # unrolled static loop
        h = jnp.dot(h.astype(mf_w_ref.dtype), mf_w_ref[i],
                    preferred_element_type=jnp.float32) + mf_b_ref[i]
        h = jnp.where(h >= 0, h, LEAKY_SLOPE * h)
    return h


def _mapping_d_math(z_enc, md_w_ref, md_b_ref, mapping_layers):
    """Discriminator head: LeakyReLU FCs; last layer zero-padded to stay lane-dense."""
    d = z_enc
    for i in range(mapping_layers):
        d = jnp.dot(d.astype(md_w_ref.dtype), md_w_ref[i],
                    preferred_element_type=jnp.float32) + md_b_ref[i]
        if i < mapping_layers - 1:
            d = jnp.where(d >= 0, d, LEAKY_SLOPE * d)
    return d


def _masked_mse(a, b, batch, denom):
    """mean((a-b)^2) over the first `batch` rows only (batch dim is padded to 8)."""
    rows = jax.lax.broadcasted_iota(jnp.int32, a.shape, 0)
    mask = (rows < batch).astype(jnp.float32)
    diff = (a - b) * mask
    return jnp.sum(diff * diff) * (1.0 / denom)


# ------------------------------------------------------------------ unified fused kernel

def _ae_forward_kernel(z_ref, mf_w_ref, mf_b_ref, dec_w_ref, dec_b_ref,
                       enc_w_ref, enc_b_ref, md_w_ref, md_b_ref,
                       d_ref, lae_ref, s_ref, acc_ref,
                       *, batch, mapping_layers, latent):
    k = pl.program_id(0)
    nk = pl.num_programs(0)

    @pl.when(k == 0)
    def _():
        # mapping_f: styles s = mapping_f(z)[:, 0]. The [num_layers]-tiled style
        # stack of the reference is never consumed downstream -> not materialized.
        s_ref[...] = _mapping_f_math(z_ref[...], mf_w_ref, mf_b_ref, mapping_layers)
        acc_ref[...] = jnp.zeros_like(acc_ref)

    # decoder->encoder stand-ins fused on this pixel chunk (bf16 weights, f32 acc);
    # the reconstructed-image chunk never leaves VMEM.
    rec = jnp.dot(s_ref[...].astype(dec_w_ref.dtype), dec_w_ref[...],
                  preferred_element_type=jnp.float32) + dec_b_ref[...]
    acc_ref[...] += jnp.dot(rec.astype(enc_w_ref.dtype), enc_w_ref[...],
                            preferred_element_type=jnp.float32)

    @pl.when(k == nk - 1)
    def _():
        z_enc = acc_ref[...] + enc_b_ref[...]
        # discriminator prediction lives in column 0 of the padded, lane-dense slab
        d_ref[...] = _mapping_d_math(z_enc, md_w_ref, md_b_ref, mapping_layers)
        # Lae = mean((Z - s.detach())**2); forward-only, so detach is a no-op.
        mse = _masked_mse(z_enc, s_ref[...], batch, float(batch * latent))
        lae_ref[...] = jnp.full(lae_ref.shape, mse, jnp.float32)


# ------------------------------------------------------------------ Model

class Model:
    def __init__(self, startf=32, maxf=256, layer_count=3, latent_size=128,
                 mapping_layers=5, channels=3, z_regression=False, seed=0):
        self.layer_count = layer_count
        self.latent_size = latent_size
        self.startf = startf
        self.maxf = maxf
        self.channels = channels
        self.z_regression = z_regression
        self.mapping_layers = mapping_layers
        self.num_layers = layer_count * 2          # mapping_f.num_layers

        self._keys = list(jax.random.split(jax.random.PRNGKey(seed), 128))
        self._key_i = 0
        self._forward_calls = 0

        L = latent_size

        # MappingF: pixelnorm + mapping_layers FC (latent -> latent), bf16 weights.
        self.mf_w = jnp.stack([self._init_w(L, L) for _ in range(mapping_layers)]
                              ).astype(jnp.bfloat16)
        self.mf_b = jnp.stack([self._init_b(L) for _ in range(mapping_layers)])[:, None]

        # MappingD: mapping_layers FC; last layer (latent -> 1) zero-padded to
        # (latent -> latent) so every kernel intermediate/output is lane-dense.
        md_w, md_b = [], []
        for i in range(mapping_layers):
            if i < mapping_layers - 1:
                md_w.append(self._init_w(L, L))
                md_b.append(self._init_b(L))
            else:
                md_w.append(jnp.zeros((L, L), jnp.float32).at[:, :1].set(self._init_w(L, 1)))
                md_b.append(jnp.zeros((L,), jnp.float32).at[:1].set(self._init_b(1)))
        self.md_w = jnp.stack(md_w).astype(jnp.bfloat16)
        self.md_b = jnp.stack(md_b)[:, None]

        # DLatent buffer (registered but unused: dlatent_avg_beta is None by default,
        # truncation / style mixing are also disabled by the reference defaults).
        self.dlatent_avg = jnp.zeros((self.num_layers, L), jnp.float32)

        self._raw_cache = {}
        self._pad_cache = {}

    # ---- parameter init helpers -------------------------------------------------
    def _next_key(self):
        k = self._keys[self._key_i]
        self._key_i += 1
        return k

    def _init_w(self, fan_in, fan_out):
        return (jax.random.normal(self._next_key(), (fan_in, fan_out), jnp.float32)
                * jnp.sqrt(2.0 / fan_in))

    def _init_b(self, fan_out):
        return 0.1 * jax.random.normal(self._next_key(), (fan_out,), jnp.float32)

    # ---- decoder / encoder stand-in parameters ----------------------------------
    def _raw_dec_enc(self, lod):
        # TODO(synk): real GENERATORS/ENCODERS (StyleGAN-style conv towers with noise
        # injection / progressive blending) are not defined in the reference source;
        # deterministic linear decoder/encoder stand-ins are used instead.
        if lod not in self._raw_cache:
            H = W = 4 * (2 ** lod)
            pix = self.channels * H * W
            L = self.latent_size
            self._raw_cache[lod] = (self._init_w(L, pix), self._init_b(pix),
                                    self._init_w(pix, L), self._init_b(L))
        return self._raw_cache[lod]

    def _dec_enc_params(self, lod, tile_k):
        """Padded bf16 weights / f32 biases; pixel dim rounded up to a multiple of tile_k."""
        H = W = 4 * (2 ** lod)
        pix = self.channels * H * W
        pix_pad = _round_up(pix, tile_k)
        key = (lod, pix_pad)
        if key not in self._pad_cache:
            dec_w, dec_b, enc_w, enc_b = self._raw_dec_enc(lod)
            L = self.latent_size
            dec_w_p = jnp.zeros((L, pix_pad), jnp.bfloat16).at[:, :pix].set(
                dec_w.astype(jnp.bfloat16))
            dec_b_p = jnp.zeros((1, pix_pad), jnp.float32).at[:, :pix].set(dec_b[None, :])
            enc_w_p = jnp.zeros((pix_pad, L), jnp.bfloat16).at[:pix, :].set(
                enc_w.astype(jnp.bfloat16))
            enc_b_p = enc_b[None, :]
            self._pad_cache[key] = (dec_w_p, dec_b_p, enc_w_p, enc_b_p)
        return (pix_pad,) + self._pad_cache[key]

    # ---- unified single-kernel forward (all lods) --------------------------------
    def _forward_ae(self, z_pad, batch, lod, tile_k):
        n_pad = z_pad.shape[0]
        L = self.latent_size
        ML = self.mapping_layers
        pix = self.channels * (4 * (2 ** lod)) ** 2
        tile_k = min(_round_up(max(tile_k, 128), 128), _round_up(pix, 128))
        pix_pad, dec_w, dec_b, enc_w, enc_b = self._dec_enc_params(lod, tile_k)
        num_k = pix_pad // tile_k

        kernel = functools.partial(_ae_forward_kernel, batch=batch,
                                   mapping_layers=ML, latent=L)

        in_specs = [
            pl.BlockSpec((n_pad, L), lambda k: (0, 0)),           # z (resident)
            pl.BlockSpec((ML, L, L), lambda k: (0, 0, 0)),        # mapping_f weights
            pl.BlockSpec((ML, 1, L), lambda k: (0, 0, 0)),        # mapping_f biases
            pl.BlockSpec((L, tile_k), lambda k: (0, k)),          # decoder weight chunk
            pl.BlockSpec((1, tile_k), lambda k: (0, k)),          # decoder bias chunk
            pl.BlockSpec((tile_k, L), lambda k: (k, 0)),          # encoder weight chunk
            pl.BlockSpec((1, L), lambda k: (0, 0)),               # encoder bias
            pl.BlockSpec((ML, L, L), lambda k: (0, 0, 0)),        # mapping_d weights
            pl.BlockSpec((ML, 1, L), lambda k: (0, 0, 0)),        # mapping_d biases
        ]
        out_specs = (
            pl.BlockSpec((n_pad, L), lambda k: (0, 0)),           # d prediction slab
            pl.BlockSpec((1, L), lambda k: (0, 0)),               # Lae (lane-dense slab)
        )
        d_out, lae = pl.pallas_call(
            kernel,
            out_shape=(jax.ShapeDtypeStruct((n_pad, L), jnp.float32),
                       jax.ShapeDtypeStruct((1, L), jnp.float32)),
            grid=(num_k,),
            in_specs=in_specs,
            out_specs=out_specs,
            scratch_shapes=[pltpu.VMEM((n_pad, L), jnp.float32),   # s (styles)
                            pltpu.VMEM((n_pad, L), jnp.float32)],  # z_enc accumulator
            compiler_params=pltpu.CompilerParams(
                dimension_semantics=("arbitrary",),
                vmem_limit_bytes=40 * 1024 * 1024,
            ),
        )(z_pad, self.mf_w, self.mf_b, dec_w, dec_b, enc_w, enc_b,
          self.md_w, self.md_b)
        return lae[0, 0], d_out[:batch, :1]

    # ---- public forward -----------------------------------------------------------
    def forward(self, x, lod, blend_factor, d_train, ae, *,
                tile_k=DEFAULT_TILE_K, rng_key=None):
        del blend_factor  # linear stand-ins have no progressive blending
        del d_train       # unused on the ae=True path (as in the reference)
        batch = int(x.shape[0])
        if not ae:
            # TODO(synk): d_train / generator branches need
            # losses.discriminator_logistic_simple_gp / generator_logistic_non_saturating,
            # which are not provided in the reference source.
            raise NotImplementedError("only the ae=True branch is implemented")

        L = self.latent_size
        if rng_key is None:
            rng_key = jax.random.fold_in(jax.random.PRNGKey(42), self._forward_calls)
        self._forward_calls += 1
        z = jax.random.normal(rng_key, (batch, L), jnp.float32)

        if self.z_regression:
            # TODO(synk): the reference computes mean((Z[:0] - z)**2) over an empty
            # slice (PyTorch bug -> NaN); the default path is z_regression=False.
            return jnp.array(jnp.nan, jnp.float32)

        n_pad = max(8, _round_up(batch, 8))          # (8,128) f32 sublane tile
        z_pad = jnp.pad(z, ((0, n_pad - batch), (0, 0)))

        lae, _d_fake = self._forward_ae(z_pad, batch, lod, tile_k)
        return lae


# ------------------------------------------------------------------ pure-JAX reference

def _reference_lae(model, batch, lod, rng_key):
    L = model.latent_size
    z = jax.random.normal(rng_key, (batch, L), jnp.float32)
    h = z * jax.lax.rsqrt(jnp.mean(z * z, axis=-1, keepdims=True) + PIXELNORM_EPS)
    for i in range(model.mapping_layers):
        h = jnp.dot(h.astype(jnp.bfloat16), model.mf_w[i],
                    preferred_element_type=jnp.float32) + model.mf_b[i]
        h = jnp.where(h >= 0, h, LEAKY_SLOPE * h)
    dec_w, dec_b, enc_w, enc_b = model._raw_dec_enc(lod)
    rec = jnp.dot(h.astype(jnp.bfloat16), dec_w.astype(jnp.bfloat16),
                  preferred_element_type=jnp.float32) + dec_b
    z_enc = jnp.dot(rec.astype(jnp.bfloat16), enc_w.astype(jnp.bfloat16),
                    preferred_element_type=jnp.float32) + enc_b
    return jnp.mean((z_enc - h) ** 2)


# ------------------------------------------------------------------ main

if __name__ == "__main__":
    model = Model(startf=32, maxf=256, layer_count=3, latent_size=128,
                  mapping_layers=5, channels=3, z_regression=False, seed=0)
    batch = 2
    base = jax.random.PRNGKey(0)

    # --- lod 1 (8x8 image): pix_pad=256, single grid step -> fully fused 1-call path
    lod = 1
    H = W = 4 * (2 ** lod)
    x = jax.random.normal(jax.random.fold_in(base, 0),
                          (batch, model.channels, H, W), jnp.float32)  # NCHW
    zkey = jax.random.fold_in(base, 100)
    lae = model.forward(x, lod=lod, blend_factor=1.0, d_train=False, ae=True,
                        rng_key=zkey)
    lae = jax.block_until_ready(lae)
    assert lae.shape == () and bool(jnp.isfinite(lae))
    ref = _reference_lae(model, batch, lod, zkey)
    assert jnp.allclose(lae, ref, rtol=5e-2, atol=1e-3), (float(lae), float(ref))

    # --- lod 2 (16x16 image) with a deliberately small tile_k: exercises the
    #     multi-step K-reduction grid inside the same single pallas_call ----------
    lod2 = 2
    H2 = W2 = 4 * (2 ** lod2)
    x2 = jax.random.normal(jax.random.fold_in(base, 1),
                           (batch, model.channels, H2, W2), jnp.float32)
    zkey2 = jax.random.fold_in(base, 101)
    lae2 = model.forward(x2, lod=lod2, blend_factor=1.0, d_train=False, ae=True,
                         tile_k=128, rng_key=zkey2)
    lae2 = jax.block_until_ready(lae2)
    assert lae2.shape == () and bool(jnp.isfinite(lae2))
    ref2 = _reference_lae(model, batch, lod2, zkey2)
    assert jnp.allclose(lae2, ref2, rtol=5e-2, atol=1e-3), (float(lae2), float(ref2))

    print("KERNEL_OK")
</pallas_src>

<mosaic_0001>
module attributes {stable_mosaic.version = 11 : i64} {
  func.func @_ae_forward_kernel(%arg0: i32, %arg1: memref<8x128xf32, #tpu.memory_space<vmem>>, %arg2: memref<5x128x128xbf16, #tpu.memory_space<vmem>>, %arg3: memref<5x1x128xf32, #tpu.memory_space<vmem>>, %arg4: memref<128x256xbf16, #tpu.memory_space<vmem>>, %arg5: memref<1x256xf32, #tpu.memory_space<vmem>>, %arg6: memref<256x128xbf16, #tpu.memory_space<vmem>>, %arg7: memref<1x128xf32, #tpu.memory_space<vmem>>, %arg8: memref<5x128x128xbf16, #tpu.memory_space<vmem>>, %arg9: memref<5x1x128xf32, #tpu.memory_space<vmem>>, %arg10: memref<8x128xf32, #tpu.memory_space<vmem>>, %arg11: memref<1x128xf32, #tpu.memory_space<vmem>>, %arg12: memref<8x128xf32, #tpu.memory_space<vmem>>, %arg13: memref<8x128xf32, #tpu.memory_space<vmem>>) attributes {dimension_semantics = [#tpu.dimension_semantics<arbitrary>], iteration_bounds = array<i64: 1>, scalar_prefetch = 0 : i64, scratch_operands = 2 : i64, tpu.core_type = #tpu.core_type<tc>, window_params = [{pipeline_mode = #tpu.pipeline_mode<synchronous>, transform_indices = @transform_0, window_bounds = array<i64: 8, 128>}, {pipeline_mode = #tpu.pipeline_mode<synchronous>, transform_indices = @transform_1, window_bounds = array<i64: 5, 128, 128>}, {pipeline_mode = #tpu.pipeline_mode<synchronous>, transform_indices = @transform_2, window_bounds = array<i64: 5, 1, 128>}, {transform_indices = @transform_3, window_bounds = array<i64: 128, 256>}, {transform_indices = @transform_4, window_bounds = array<i64: 1, 256>}, {transform_indices = @transform_5, window_bounds = array<i64: 256, 128>}, {pipeline_mode = #tpu.pipeline_mode<synchronous>, transform_indices = @transform_6, window_bounds = array<i64: 1, 128>}, {pipeline_mode = #tpu.pipeline_mode<synchronous>, transform_indices = @transform_7, window_bounds = array<i64: 5, 128, 128>}, {pipeline_mode = #tpu.pipeline_mode<synchronous>, transform_indices = @transform_8, window_bounds = array<i64: 5, 1, 128>}, {pipeline_mode = #tpu.pipeline_mode<synchronous>, transform_indices = @transform_9, window_bounds = array<i64: 8, 128>}, {pipeline_mode = #tpu.pipeline_mode<synchronous>, transform_indices = @transform_10, window_bounds = array<i64: 1, 128>}]} {
    %c0_i32 = arith.constant 0 : i32
    %0 = arith.cmpi eq, %arg0, %c0_i32 : i32
    %1 = arith.extui %0 : i1 to i32
    %c0_i32_0 = arith.constant 0 : i32
    %2 = arith.cmpi ne, %1, %c0_i32_0 : i32
    scf.if %2 {
      %c0_15 = arith.constant 0 : index
      %c0_16 = arith.constant 0 : index
      %19 = vector.load %arg1[%c0_15, %c0_16] : memref<8x128xf32, #tpu.memory_space<vmem>>, vector<8x128xf32>
      %20 = arith.mulf %19, %19 : vector<8x128xf32>
      %cst_17 = arith.constant dense<0.000000e+00> : vector<8xf32>
      %21 = vector.multi_reduction <add>, %20, %cst_17 [1] : vector<8x128xf32> to vector<8xf32>
      %22 = vector.shape_cast %21 : vector<8xf32> to vector<8x1xf32>
      %cst_18 = arith.constant 1.280000e+02 : f32
      %23 = vector.broadcast %cst_18 : f32 to vector<8x1xf32>
      %24 = arith.divf %22, %23 : vector<8x1xf32>
      %cst_19 = arith.constant 9.99999993E-9 : f32
      %25 = vector.broadcast %cst_19 : f32 to vector<8x1xf32>
      %26 = arith.addf %24, %25 : vector<8x1xf32>
      %27 = math.rsqrt %26 : vector<8x1xf32>
      %28 = vector.broadcast %27 : vector<8x1xf32> to vector<8x128xf32>
      %29 = arith.mulf %19, %28 : vector<8x128xf32>
      %30 = arith.truncf %29 : vector<8x128xf32> to vector<8x128xbf16>
      %c0_20 = arith.constant 0 : index
      %c0_21 = arith.constant 0 : index
      %c0_22 = arith.constant 0 : index
      %31 = vector.load %arg2[%c0_20, %c0_21, %c0_22] : memref<5x128x128xbf16, #tpu.memory_space<vmem>>, vector<1x128x128xbf16>
      %32 = vector.shape_cast %31 : vector<1x128x128xbf16> to vector<128x128xbf16>
      %cst_23 = arith.constant dense<0.000000e+00> : vector<8x128xf32>
      %33 = tpu.matmul %30, %32, %cst_23 {dimension_numbers = #tpu.dot_dimension_numbers<[1], [0], [0], [1], [0, 0, 1, 1], [], []>} : vector<8x128xbf16>, vector<128x128xbf16>, vector<8x128xf32> -> vector<8x128xf32>
      %c0_24 = arith.constant 0 : index
      %c0_25 = arith.constant 0 : index
      %c0_26 = arith.constant 0 : index
      %34 = vector.load %arg3[%c0_24, %c0_25, %c0_26] : memref<5x1x128xf32, #tpu.memory_space<vmem>>, vector<1x1x128xf32>
      %35 = vector.shape_cast %34 : vector<1x1x128xf32> to vector<1x128xf32>
      %36 = vector.broadcast %35 : vector<1x128xf32> to vector<8x128xf32>
      %37 = arith.addf %33, %36 : vector<8x128xf32>
      %cst_27 = arith.constant 0.000000e+00 : f32
      %38 = vector.broadcast %cst_27 : f32 to vector<8x128xf32>
      %39 = arith.cmpf oge, %37, %38 : vector<8x128xf32>
      %cst_28 = arith.constant 2.000000e-01 : f32
      %40 = vector.broadcast %cst_28 : f32 to vector<8x128xf32>
      %41 = arith.mulf %40, %37 : vector<8x128xf32>
      %42 = arith.select %39, %37, %41 : vector<8x128xi1>, vector<8x128xf32>
      %43 = arith.truncf %42 : vector<8x128xf32> to vector<8x128xbf16>
      %c1 = arith.constant 1 : index
      %c0_29 = arith.constant 0 : index
      %c0_30 = arith.constant 0 : index
      %44 = vector.load %arg2[%c1, %c0_29, %c0_30] : memref<5x128x128xbf16, #tpu.memory_space<vmem>>, vector<1x128x128xbf16>
      %45 = vector.shape_cast %44 : vector<1x128x128xbf16> to vector<128x128xbf16>
      %cst_31 = arith.constant dense<0.000000e+00> : vector<8x128xf32>
      %46 = tpu.matmul %43, %45, %cst_31 {dimension_numbers = #tpu.dot_dimension_numbers<[1], [0], [0], [1], [0, 0, 1, 1], [], []>} : vector<8x128xbf16>, vector<128x128xbf16>, vector<8x128xf32> -> vector<8x128xf32>
      %c1_32 = arith.constant 1 : index
      %c0_33 = arith.constant 0 : index
      %c0_34 = arith.constant 0 : index
      %47 = vector.load %arg3[%c1_32, %c0_33, %c0_34] : memref<5x1x128xf32, #tpu.memory_space<vmem>>, vector<1x1x128xf32>
      %48 = vector.shape_cast %47 : vector<1x1x128xf32> to vector<1x128xf32>
      %49 = vector.broadcast %48 : vector<1x128xf32> to vector<8x128xf32>
      %50 = arith.addf %46, %49 : vector<8x128xf32>
      %cst_35 = arith.constant 0.000000e+00 : f32
      %51 = vector.broadcast %cst_35 : f32 to vector<8x128xf32>
      %52 = arith.cmpf oge, %50, %51 : vector<8x128xf32>
      %cst_36 = arith.constant 2.000000e-01 : f32
      %53 = vector.broadcast %cst_36 : f32 to vector<8x128xf32>
      %54 = arith.mulf %53, %50 : vector<8x128xf32>
      %55 = arith.select %52, %50, %54 : vector<8x128xi1>, vector<8x128xf32>
      %56 = arith.truncf %55 : vector<8x128xf32> to vector<8x128xbf16>
      %c2 = arith.constant 2 : index
      %c0_37 = arith.constant 0 : index
      %c0_38 = arith.constant 0 : index
      %57 = vector.load %arg2[%c2, %c0_37, %c0_38] : memref<5x128x128xbf16, #tpu.memory_space<vmem>>, vector<1x128x128xbf16>
      %58 = vector.shape_cast %57 : vector<1x128x128xbf16> to vector<128x128xbf16>
      %cst_39 = arith.constant dense<0.000000e+00> : vector<8x128xf32>
      %59 = tpu.matmul %56, %58, %cst_39 {dimension_numbers = #tpu.dot_dimension_numbers<[1], [0], [0], [1], [0, 0, 1, 1], [], []>} : vector<8x128xbf16>, vector<128x128xbf16>, vector<8x128xf32> -> vector<8x128xf32>
      %c2_40 = arith.constant 2 : index
      %c0_41 = arith.constant 0 : index
      %c0_42 = arith.constant 0 : index
      %60 = vector.load %arg3[%c2_40, %c0_41, %c0_42] : memref<5x1x128xf32, #tpu.memory_space<vmem>>, vector<1x1x128xf32>
      %61 = vector.shape_cast %60 : vector<1x1x128xf32> to vector<1x128xf32>
      %62 = vector.broadcast %61 : vector<1x128xf32> to vector<8x128xf32>
      %63 = arith.addf %59, %62 : vector<8x128xf32>
      %cst_43 = arith.constant 0.000000e+00 : f32
      %64 = vector.broadcast %cst_43 : f32 to vector<8x128xf32>
      %65 = arith.cmpf oge, %63, %64 : vector<8x128xf32>
      %cst_44 = arith.constant 2.000000e-01 : f32
      %66 = vector.broadcast %cst_44 : f32 to vector<8x128xf32>
      %67 = arith.mulf %66, %63 : vector<8x128xf32>
      %68 = arith.select %65, %63, %67 : vector<8x128xi1>, vector<8x128xf32>
      %69 = arith.truncf %68 : vector<8x128xf32> to vector<8x128xbf16>
      %c3 = arith.constant 3 : index
      %c0_45 = arith.constant 0 : index
      %c0_46 = arith.constant 0 : index
      %70 = vector.load %arg2[%c3, %c0_45, %c0_46] : memref<5x128x128xbf16, #tpu.memory_space<vmem>>, vector<1x128x128xbf16>
      %71 = vector.shape_cast %70 : vector<1x128x128xbf16> to vector<128x128xbf16>
      %cst_47 = arith.constant dense<0.000000e+00> : vector<8x128xf32>
      %72 = tpu.matmul %69, %71, %cst_47 {dimension_numbers = #tpu.dot_dimension_numbers<[1], [0], [0], [1], [0, 0, 1, 1], [], []>} : vector<8x128xbf16>, vector<128x128xbf16>, vector<8x128xf32> -> vector<8x128xf32>
      %c3_48 = arith.constant 3 : index
      %c0_49 = arith.constant 0 : index
      %c0_50 = arith.constant 0 : index
      %73 = vector.load %arg3[%c3_48, %c0_49, %c0_50] : memref<5x1x128xf32, #tpu.memory_space<vmem>>, vector<1x1x128xf32>
      %74 = vector.shape_cast %73 : vector<1x1x128xf32> to vector<1x128xf32>
      %75 = vector.broadcast %74 : vector<1x128xf32> to vector<8x128xf32>
      %76 = arith.addf %72, %75 : vector<8x128xf32>
      %cst_51 = arith.constant 0.000000e+00 : f32
      %77 = vector.broadcast %cst_51 : f32 to vector<8x128xf32>
      %78 = arith.cmpf oge, %76, %77 : vector<8x128xf32>
      %cst_52 = arith.constant 2.000000e-01 : f32
      %79 = vector.broadcast %cst_52 : f32 to vector<8x128xf32>
      %80 = arith.mulf %79, %76 : vector<8x128xf32>
      %81 = arith.select %78, %76, %80 : vector<8x128xi1>, vector<8x128xf32>
      %82 = arith.truncf %81 : vector<8x128xf32> to vector<8x128xbf16>
      %c4 = arith.constant 4 : index
      %c0_53 = arith.constant 0 : index
      %c0_54 = arith.constant 0 : index
      %83 = vector.load %arg2[%c4, %c0_53, %c0_54] : memref<5x128x128xbf16, #tpu.memory_space<vmem>>, vector<1x128x128xbf16>
      %84 = vector.shape_cast %83 : vector<1x128x128xbf16> to vector<128x128xbf16>
      %cst_55 = arith.constant dense<0.000000e+00> : vector<8x128xf32>
      %85 = tpu.matmul %82, %84, %cst_55 {dimension_numbers = #tpu.dot_dimension_numbers<[1], [0], [0], [1], [0, 0, 1, 1], [], []>} : vector<8x128xbf16>, vector<128x128xbf16>, vector<8x128xf32> -> vector<8x128xf32>
      %c4_56 = arith.constant 4 : index
      %c0_57 = arith.constant 0 : index
      %c0_58 = arith.constant 0 : index
      %86 = vector.load %arg3[%c4_56, %c0_57, %c0_58] : memref<5x1x128xf32, #tpu.memory_space<vmem>>, vector<1x1x128xf32>
      %87 = vector.shape_cast %86 : vector<1x1x128xf32> to vector<1x128xf32>
      %88 = vector.broadcast %87 : vector<1x128xf32> to vector<8x128xf32>
      %89 = arith.addf %85, %88 : vector<8x128xf32>
      %cst_59 = arith.constant 0.000000e+00 : f32
      %90 = vector.broadcast %cst_59 : f32 to vector<8x128xf32>
      %91 = arith.cmpf oge, %89, %90 : vector<8x128xf32>
      %cst_60 = arith.constant 2.000000e-01 : f32
      %92 = vector.broadcast %cst_60 : f32 to vector<8x128xf32>
      %93 = arith.mulf %92, %89 : vector<8x128xf32>
      %94 = arith.select %91, %89, %93 : vector<8x128xi1>, vector<8x128xf32>
      %c0_61 = arith.constant 0 : index
      %c0_62 = arith.constant 0 : index
      %95 = vector.load %arg12[%c0_61, %c0_62] : memref<8x128xf32, #tpu.memory_space<vmem>>, vector<8x128xf32>
      tpu.vector_store %arg12[%c0_61, %c0_62], %94 {strides = array<i32>} : memref<8x128xf32, #tpu.memory_space<vmem>>, vector<8x128xf32>,
      %cst_63 = arith.constant 0.000000e+00 : f32
      %96 = vector.broadcast %cst_63 : f32 to vector<8x128xf32>
      %c0_64 = arith.constant 0 : index
      %c0_65 = arith.constant 0 : index
      %97 = vector.load %arg13[%c0_64, %c0_65] : memref<8x128xf32, #tpu.memory_space<vmem>>, vector<8x128xf32>
      tpu.vector_store %arg13[%c0_64, %c0_65], %96 {strides = array<i32>} : memref<8x128xf32, #tpu.memory_space<vmem>>, vector<8x128xf32>,
    } else {
    }
    %c0 = arith.constant 0 : index
    %c0_1 = arith.constant 0 : index
    %3 = vector.load %arg12[%c0, %c0_1] : memref<8x128xf32, #tpu.memory_space<vmem>>, vector<8x128xf32>
    %4 = arith.truncf %3 : vector<8x128xf32> to vector<8x128xbf16>
    %c0_2 = arith.constant 0 : index
    %c0_3 = arith.constant 0 : index
    %5 = vector.load %arg4[%c0_2, %c0_3] : memref<128x256xbf16, #tpu.memory_space<vmem>>, vector<128x256xbf16>
    %cst = arith.constant dense<0.000000e+00> : vector<8x256xf32>
    %6 = tpu.matmul %4, %5, %cst {dimension_numbers = #tpu.dot_dimension_numbers<[1], [0], [0], [1], [0, 0, 1, 1], [], []>} : vector<8x128xbf16>, vector<128x256xbf16>, vector<8x256xf32> -> vector<8x256xf32>
    %c0_4 = arith.constant 0 : index
    %c0_5 = arith.constant 0 : index
    %7 = vector.load %arg5[%c0_4, %c0_5] : memref<1x256xf32, #tpu.memory_space<vmem>>, vector<1x256xf32>
    %8 = vector.broadcast %7 : vector<1x256xf32> to vector<8x256xf32>
    %9 = arith.addf %6, %8 : vector<8x256xf32>
    %c0_6 = arith.constant 0 : index
    %c0_7 = arith.constant 0 : index
    %10 = vector.load %arg13[%c0_6, %c0_7] : memref<8x128xf32, #tpu.memory_space<vmem>>, vector<8x128xf32>
    %11 = arith.truncf %9 : vector<8x256xf32> to vector<8x256xbf16>
    %c0_8 = arith.constant 0 : index
    %c0_9 = arith.constant 0 : index
    %12 = vector.load %arg6[%c0_8, %c0_9] : memref<256x128xbf16, #tpu.memory_space<vmem>>, vector<256x128xbf16>
    %cst_10 = arith.constant dense<0.000000e+00> : vector<8x128xf32>
    %13 = tpu.matmul %11, %12, %cst_10 {dimension_numbers = #tpu.dot_dimension_numbers<[1], [0], [0], [1], [0, 0, 1, 1], [], []>} : vector<8x256xbf16>, vector<256x128xbf16>, vector<8x128xf32> -> vector<8x128xf32>
    %14 = arith.addf %10, %13 : vector<8x128xf32>
    %c0_11 = arith.constant 0 : index
    %c0_12 = arith.constant 0 : index
    %15 = vector.load %arg13[%c0_11, %c0_12] : memref<8x128xf32, #tpu.memory_space<vmem>>, vector<8x128xf32>
    tpu.vector_store %arg13[%c0_11, %c0_12], %14 {strides = array<i32>} : memref<8x128xf32, #tpu.memory_space<vmem>>, vector<8x128xf32>,
    %c0_i32_13 = arith.constant 0 : i32
    %16 = arith.cmpi eq, %arg0, %c0_i32_13 : i32
    %17 = arith.extui %16 : i1 to i32
    %c0_i32_14 = arith.constant 0 : i32
    %18 = arith.cmpi ne, %17, %c0_i32_14 : i32
    scf.if %18 {
      %c0_15 = arith.constant 0 : index
      %c0_16 = arith.constant 0 : index
      %19 = vector.load %arg13[%c0_15, %c0_16] : memref<8x128xf32, #tpu.memory_space<vmem>>, vector<8x128xf32>
      %c0_17 = arith.constant 0 : index
      %c0_18 = arith.constant 0 : index
      %20 = vector.load %arg7[%c0_17, %c0_18] : memref<1x128xf32, #tpu.memory_space<vmem>>, vector<1x128xf32>
      %21 = vector.broadcast %20 : vector<1x128xf32> to vector<8x128xf32>
      %22 = arith.addf %19, %21 : vector<8x128xf32>
      %23 = arith.truncf %22 : vector<8x128xf32> to vector<8x128xbf16>
      %c0_19 = arith.constant 0 : index
      %c0_20 = arith.constant 0 : index
      %c0_21 = arith.constant 0 : index
      %24 = vector.load %arg8[%c0_19, %c0_20, %c0_21] : memref<5x128x128xbf16, #tpu.memory_space<vmem>>, vector<1x128x128xbf16>
      %25 = vector.shape_cast %24 : vector<1x128x128xbf16> to vector<128x128xbf16>
      %cst_22 = arith.constant dense<0.000000e+00> : vector<8x128xf32>
      %26 = tpu.matmul %23, %25, %cst_22 {dimension_numbers = #tpu.dot_dimension_numbers<[1], [0], [0], [1], [0, 0, 1, 1], [], []>} : vector<8x128xbf16>, vector<128x128xbf16>, vector<8x128xf32> -> vector<8x128xf32>
      %c0_23 = arith.constant 0 : index
      %c0_24 = arith.constant 0 : index
      %c0_25 = arith.constant 0 : index
      %27 = vector.load %arg9[%c0_23, %c0_24, %c0_25] : memref<5x1x128xf32, #tpu.memory_space<vmem>>, vector<1x1x128xf32>
      %28 = vector.shape_cast %27 : vector<1x1x128xf32> to vector<1x128xf32>
      %29 = vector.broadcast %28 : vector<1x128xf32> to vector<8x128xf32>
      %30 = arith.addf %26, %29 : vector<8x128xf32>
      %cst_26 = arith.constant 0.000000e+00 : f32
      %31 = vector.broadcast %cst_26 : f32 to vector<8x128xf32>
      %32 = arith.cmpf oge, %30, %31 : vector<8x128xf32>
      %cst_27 = arith.constant 2.000000e-01 : f32
      %33 = vector.broadcast %cst_27 : f32 to vector<8x128xf32>
      %34 = arith.mulf %33, %30 : vector<8x128xf32>
      %35 = arith.select %32, %30, %34 : vector<8x128xi1>, vector<8x128xf32>
      %36 = arith.truncf %35 : vector<8x128xf32> to vector<8x128xbf16>
      %c1 = arith.constant 1 : index
      %c0_28 = arith.constant 0 : index
      %c0_29 = arith.constant 0 : index
      %37 = vector.load %arg8[%c1, %c0_28, %c0_29] : memref<5x128x128xbf16, #tpu.memory_space<vmem>>, vector<1x128x128xbf16>
      %38 = vector.shape_cast %37 : vector<1x128x128xbf16> to vector<128x128xbf16>
      %cst_30 = arith.constant dense<0.000000e+00> : vector<8x128xf32>
      %39 = tpu.matmul %36, %38, %cst_30 {dimension_numbers = #tpu.dot_dimension_numbers<[1], [0], [0], [1], [0, 0, 1, 1], [], []>} : vector<8x128xbf16>, vector<128x128xbf16>, vector<8x128xf32> -> vector<8x128xf32>
      %c1_31 = arith.constant 1 : index
      %c0_32 = arith.constant 0 : index
      %c0_33 = arith.constant 0 : index
      %40 = vector.load %arg9[%c1_31, %c0_32, %c0_33] : memref<5x1x128xf32, #tpu.memory_space<vmem>>, vector<1x1x128xf32>
      %41 = vector.shape_cast %40 : vector<1x1x128xf32> to vector<1x128xf32>
      %42 = vector.broadcast %41 : vector<1x128xf32> to vector<8x128xf32>
      %43 = arith.addf %39, %42 : vector<8x128xf32>
      %cst_34 = arith.constant 0.000000e+00 : f32
      %44 = vector.broadcast %cst_34 : f32 to vector<8x128xf32>
      %45 = arith.cmpf oge, %43, %44 : vector<8x128xf32>
      %cst_35 = arith.constant 2.000000e-01 : f32
      %46 = vector.broadcast %cst_35 : f32 to vector<8x128xf32>
      %47 = arith.mulf %46, %43 : vector<8x128xf32>
      %48 = arith.select %45, %43, %47 : vector<8x128xi1>, vector<8x128xf32>
      %49 = arith.truncf %48 : vector<8x128xf32> to vector<8x128xbf16>
      %c2 = arith.constant 2 : index
      %c0_36 = arith.constant 0 : index
      %c0_37 = arith.constant 0 : index
      %50 = vector.load %arg8[%c2, %c0_36, %c0_37] : memref<5x128x128xbf16, #tpu.memory_space<vmem>>, vector<1x128x128xbf16>
      %51 = vector.shape_cast %50 : vector<1x128x128xbf16> to vector<128x128xbf16>
      %cst_38 = arith.constant dense<0.000000e+00> : vector<8x128xf32>
      %52 = tpu.matmul %49, %51, %cst_38 {dimension_numbers = #tpu.dot_dimension_numbers<[1], [0], [0], [1], [0, 0, 1, 1], [], []>} : vector<8x128xbf16>, vector<128x128xbf16>, vector<8x128xf32> -> vector<8x128xf32>
      %c2_39 = arith.constant 2 : index
      %c0_40 = arith.constant 0 : index
      %c0_41 = arith.constant 0 : index
      %53 = vector.load %arg9[%c2_39, %c0_40, %c0_41] : memref<5x1x128xf32, #tpu.memory_space<vmem>>, vector<1x1x128xf32>
      %54 = vector.shape_cast %53 : vector<1x1x128xf32> to vector<1x128xf32>
      %55 = vector.broadcast %54 : vector<1x128xf32> to vector<8x128xf32>
      %56 = arith.addf %52, %55 : vector<8x128xf32>
      %cst_42 = arith.constant 0.000000e+00 : f32
      %57 = vector.broadcast %cst_42 : f32 to vector<8x128xf32>
      %58 = arith.cmpf oge, %56, %57 : vector<8x128xf32>
      %cst_43 = arith.constant 2.000000e-01 : f32
      %59 = vector.broadcast %cst_43 : f32 to vector<8x128xf32>
      %60 = arith.mulf %59, %56 : vector<8x128xf32>
      %61 = arith.select %58, %56, %60 : vector<8x128xi1>, vector<8x128xf32>
      %62 = arith.truncf %61 : vector<8x128xf32> to vector<8x128xbf16>
      %c3 = arith.constant 3 : index
      %c0_44 = arith.constant 0 : index
      %c0_45 = arith.constant 0 : index
      %63 = vector.load %arg8[%c3, %c0_44, %c0_45] : memref<5x128x128xbf16, #tpu.memory_space<vmem>>, vector<1x128x128xbf16>
      %64 = vector.shape_cast %63 : vector<1x128x128xbf16> to vector<128x128xbf16>
      %cst_46 = arith.constant dense<0.000000e+00> : vector<8x128xf32>
      %65 = tpu.matmul %62, %64, %cst_46 {dimension_numbers = #tpu.dot_dimension_numbers<[1], [0], [0], [1], [0, 0, 1, 1], [], []>} : vector<8x128xbf16>, vector<128x128xbf16>, vector<8x128xf32> -> vector<8x128xf32>
      %c3_47 = arith.constant 3 : index
      %c0_48 = arith.constant 0 : index
      %c0_49 = arith.constant 0 : index
      %66 = vector.load %arg9[%c3_47, %c0_48, %c0_49] : memref<5x1x128xf32, #tpu.memory_space<vmem>>, vector<1x1x128xf32>
      %67 = vector.shape_cast %66 : vector<1x1x128xf32> to vector<1x128xf32>
      %68 = vector.broadcast %67 : vector<1x128xf32> to vector<8x128xf32>
      %69 = arith.addf %65, %68 : vector<8x128xf32>
      %cst_50 = arith.constant 0.000000e+00 : f32
      %70 = vector.broadcast %cst_50 : f32 to vector<8x128xf32>
      %71 = arith.cmpf oge, %69, %70 : vector<8x128xf32>
      %cst_51 = arith.constant 2.000000e-01 : f32
      %72 = vector.broadcast %cst_51 : f32 to vector<8x128xf32>
      %73 = arith.mulf %72, %69 : vector<8x128xf32>
      %74 = arith.select %71, %69, %73 : vector<8x128xi1>, vector<8x128xf32>
      %75 = arith.truncf %74 : vector<8x128xf32> to vector<8x128xbf16>
      %c4 = arith.constant 4 : index
      %c0_52 = arith.constant 0 : index
      %c0_53 = arith.constant 0 : index
      %76 = vector.load %arg8[%c4, %c0_52, %c0_53] : memref<5x128x128xbf16, #tpu.memory_space<vmem>>, vector<1x128x128xbf16>
      %77 = vector.shape_cast %76 : vector<1x128x128xbf16> to vector<128x128xbf16>
      %cst_54 = arith.constant dense<0.000000e+00> : vector<8x128xf32>
      %78 = tpu.matmul %75, %77, %cst_54 {dimension_numbers = #tpu.dot_dimension_numbers<[1], [0], [0], [1], [0, 0, 1, 1], [], []>} : vector<8x128xbf16>, vector<128x128xbf16>, vector<8x128xf32> -> vector<8x128xf32>
      %c4_55 = arith.constant 4 : index
      %c0_56 = arith.constant 0 : index
      %c0_57 = arith.constant 0 : index
      %79 = vector.load %arg9[%c4_55, %c0_56, %c0_57] : memref<5x1x128xf32, #tpu.memory_space<vmem>>, vector<1x1x128xf32>
      %80 = vector.shape_cast %79 : vector<1x1x128xf32> to vector<1x128xf32>
      %81 = vector.broadcast %80 : vector<1x128xf32> to vector<8x128xf32>
      %82 = arith.addf %78, %81 : vector<8x128xf32>
      %c0_58 = arith.constant 0 : index
      %c0_59 = arith.constant 0 : index
      %83 = vector.load %arg10[%c0_58, %c0_59] : memref<8x128xf32, #tpu.memory_space<vmem>>, vector<8x128xf32>
      tpu.vector_store %arg10[%c0_58, %c0_59], %82 {strides = array<i32>} : memref<8x128xf32, #tpu.memory_space<vmem>>, vector<8x128xf32>,
      %c0_60 = arith.constant 0 : index
      %c0_61 = arith.constant 0 : index
      %84 = vector.load %arg12[%c0_60, %c0_61] : memref<8x128xf32, #tpu.memory_space<vmem>>, vector<8x128xf32>
      %85 = tpu.iota {dimensions = array<i32: 0>} : vector<8x128xi32>
      %c2_i32 = arith.constant 2 : i32
      %86 = vector.broadcast %c2_i32 : i32 to vector<8x128xi32>
      %87 = arith.cmpi slt, %85, %86 : vector<8x128xi32>
      %88 = arith.extui %87 : vector<8x128xi1> to vector<8x128xi32>
      %89 = arith.sitofp %88 : vector<8x128xi32> to vector<8x128xf32>
      %90 = arith.subf %22, %84 : vector<8x128xf32>
      %91 = arith.mulf %90, %89 : vector<8x128xf32>
      %92 = arith.mulf %91, %91 : vector<8x128xf32>
      %93 = vector.shape_cast %92 : vector<8x128xf32> to vector<1x8x128xf32>
      %cst_62 = arith.constant dense<0.000000e+00> : vector<1xf32>
      %94 = vector.multi_reduction <add>, %93, %cst_62 [1, 2] : vector<1x8x128xf32> to vector<1xf32>
      %95 = vector.shape_cast %94 : vector<1xf32> to vector<1x1x1xf32>
      %96 = vector.extract %95[0, 0, 0] : f32 from vector<1x1x1xf32>
      %cst_63 = arith.constant 3.906250e-03 : f32
      %97 = arith.mulf %96, %cst_63 : f32
      %98 = vector.broadcast %97 : f32 to vector<1x128xf32>
      %c0_64 = arith.constant 0 : index
      %c0_65 = arith.constant 0 : index
      %99 = vector.load %arg11[%c0_64, %c0_65] : memref<1x128xf32, #tpu.memory_space<vmem>>, vector<1x128xf32>
      tpu.vector_store %arg11[%c0_64, %c0_65], %98 {strides = array<i32>} : memref<1x128xf32, #tpu.memory_space<vmem>>, vector<1x128xf32>,
    } else {
    }
    return
  }
  func.func @transform_0(%arg0: i32) -> (i32, i32) {
    %c0_i32 = arith.constant 0 : i32
    %c0_i32_0 = arith.constant 0 : i32
    %c0_i32_1 = arith.constant 0 : i32
    return %c0_i32, %c0_i32_0 : i32, i32
  }
  func.func @transform_1(%arg0: i32) -> (i32, i32, i32) {
    %c0_i32 = arith.constant 0 : i32
    %c0_i32_0 = arith.constant 0 : i32
    %c0_i32_1 = arith.constant 0 : i32
    %c0_i32_2 = arith.constant 0 : i32
    return %c0_i32, %c0_i32_0, %c0_i32_1 : i32, i32, i32
  }
  func.func @transform_2(%arg0: i32) -> (i32, i32, i32) {
    %c0_i32 = arith.constant 0 : i32
    %c0_i32_0 = arith.constant 0 : i32
    %c0_i32_1 = arith.constant 0 : i32
    %c0_i32_2 = arith.constant 0 : i32
    return %c0_i32, %c0_i32_0, %c0_i32_1 : i32, i32, i32
  }
  func.func @transform_3(%arg0: i32) -> (i32, i32) {
    %c0_i32 = arith.constant 0 : i32
    %c0_i32_0 = arith.constant 0 : i32
    return %c0_i32, %arg0 : i32, i32
  }
  func.func @transform_4(%arg0: i32) -> (i32, i32) {
    %c0_i32 = arith.constant 0 : i32
    %c0_i32_0 = arith.constant 0 : i32
    return %c0_i32, %arg0 : i32, i32
  }
  func.func @transform_5(%arg0: i32) -> (i32, i32) {
    %c0_i32 = arith.constant 0 : i32
    %c0_i32_0 = arith.constant 0 : i32
    return %arg0, %c0_i32 : i32, i32
  }
  func.func @transform_6(%arg0: i32) -> (i32, i32) {
    %c0_i32 = arith.constant 0 : i32
    %c0_i32_0 = arith.constant 0 : i32
    %c0_i32_1 = arith.constant 0 : i32
    return %c0_i32, %c0_i32_0 : i32, i32
  }
  func.func @transform_7(%arg0: i32) -> (i32, i32, i32) {
    %c0_i32 = arith.constant 0 : i32
    %c0_i32_0 = arith.constant 0 : i32
    %c0_i32_1 = arith.constant 0 : i32
    %c0_i32_2 = arith.constant 0 : i32
    return %c0_i32, %c0_i32_0, %c0_i32_1 : i32, i32, i32
  }
  func.func @transform_8(%arg0: i32) -> (i32, i32, i32) {
    %c0_i32 = arith.constant 0 : i32
    %c0_i32_0 = arith.constant 0 : i32
    %c0_i32_1 = arith.constant 0 : i32
    %c0_i32_2 = arith.constant 0 : i32
    return %c0_i32, %c0_i32_0, %c0_i32_1 : i32, i32, i32
  }
  func.func @transform_9(%arg0: i32) -> (i32, i32) {
    %c0_i32 = arith.constant 0 : i32
    %c0_i32_0 = arith.constant 0 : i32
    %c0_i32_1 = arith.constant 0 : i32
    return %c0_i32, %c0_i32_0 : i32, i32
  }
  func.func @transform_10(%arg0: i32) -> (i32, i32) {
    %c0_i32 = arith.constant 0 : i32
    %c0_i32_0 = arith.constant 0 : i32
    %c0_i32_1 = arith.constant 0 : i32
    return %c0_i32, %c0_i32_0 : i32, i32
  }
}

</mosaic_0001>

<bundles_post_ra>
// kernel: tpu_custom_call.1
= control target key start
LH: loop header
LB: loop body
LE: loop exit
PB: predicated region body
PF: predicated region fallthrough
CT: control target
= control target key end

     0   :  { %16 = vsyncpa [#allocation5], 0  ;;  %s2348_s0 = inlined_call_operand.hbm [shape: f32[8,128], index: 0, kind: input, shape index: {}]   ;;  %s2349_s1 = inlined_call_operand.hbm [shape: bf16[5,128,128], index: 1, kind: input, shape index: {}]   ;;  %s2350_s2 = inlined_call_operand.hbm [shape: f32[5,1,128], index: 2, kind: input, shape index: {}]   ;;  %s2351_s3 = inlined_call_operand.hbm [shape: bf16[128,256], index: 3, kind: input, shape index: {}]   ;;  %s2352_s4 = inlined_call_operand.vmem [shape: f32[1,256], index: 4, kind: input, shape index: {}]   ;;  %s2353_s5 = inlined_call_operand.hbm [shape: bf16[256,128], index: 5, kind: input, shape index: {}]   ;;  %s2354_s6 = inlined_call_operand.hbm [shape: f32[1,128], index: 6, kind: input, shape index: {}]   ;;  %s2355_s7 = inlined_call_operand.hbm [shape: bf16[5,128,128], index: 7, kind: input, shape index: {}]   ;;  %s2356_s8 = inlined_call_operand.vmem [shape: f32[5,1,128], index: 8, kind: input, shape index: {}]   ;;  %s2357_s9 = inlined_call_operand.hbm [shape: f32[8,128], index: 9, kind: output, shape index: {0}]   ;;  %s2358_s10 = inlined_call_operand.hbm [shape: f32[1,128], index: 10, kind: output, shape index: {1}]  }
   0x1   :  { %17 = vsyncpa [#allocation8], 0 }
   0x2   :  { %18 = vsyncpa [#allocation11], 0 }
   0x3   :  { %19 = vsyncpa [#allocation14], 0 }
   0x4   :  { %20 = vsyncpa [#allocation6], 0  ;;  %s37_s15 = sshll.u32 %s2349_s1, 4  ;;  %s38_s15 = int_to_ptr.hbm [resolvable:$true] %s37_s15 }
   0x5   :  { %21 = vsyncpa [#allocation18], 0  ;;  %s2217_s16 = smov [#allocation7]   ;;  %s63_s20 = sshll.u32 %s2351_s3, 4  ;;  %s64_s20 = int_to_ptr.hbm [resolvable:$true] %s63_s20 }
   0x6   :  { %s39_s17 = sshll.u32 %s2217_s16, 4  ;;  %s2218_s21 = smov 64   ;;  %s40_s17 = int_to_ptr.vmem [resolvable:$true] %s39_s17 }
   0x7   :  { %s2219_s22 = smov 4   ;;  %s2220_s23 = smov [#allocation10]  }
   0x8   :  { %45 = dma.hbm_to_vmem [thread:$0]  %s38_s15, 5120, %s40_s17, [#allocation8], %s2218_s21, %s2218_s21, %s2219_s22  }
   0x9   :  { %s65_s24 = sshll.u32 %s2220_s23, 4  ;;  %s2221_s1 = smov 128   ;;  %s66_s24 = int_to_ptr.vmem [resolvable:$true] %s65_s24 }
   0xa   :  { %s2222_s25 = smov 8   ;;  %s92_s28 = sshll.u32 %s2354_s6, 4  ;;  %s93_s28 = int_to_ptr.hbm [resolvable:$true] %s92_s28 }
   0xb   :  { %71 = dma.hbm_to_vmem [thread:$0]  %s64_s20, 2048, %s66_s24, [#allocation11], %s2221_s1, %s2221_s1, %s2222_s25  }
   0xc   :  { %s2223_s29 = smov [#allocation13]   ;;  %s27_s12 = sshll.u32 %s2348_s0, 4  ;;  %s28_s12 = int_to_ptr.hbm [resolvable:$true] %s27_s12 }
   0xd   :  { %s94_s3 = sshll.u32 %s2223_s29, 4  ;;  %s2224_s13 = smov [#allocation4]   ;;  %s95_s3 = int_to_ptr.vmem [resolvable:$true] %s94_s3 }
   0xe   :  { %97 = dma.hbm_to_vmem [thread:$0]  %s93_s28, 16, %s95_s3, [#allocation14]  }
   0xf   :  { %s29_s14 = sshll.u32 %s2224_s13, 4  ;;  %s50_s17 = sshll.u32 %s2350_s2, 4  ;;  %s30_s14 = int_to_ptr.vmem [resolvable:$true] %s29_s14  ;;  %s51_s17 = int_to_ptr.hbm [resolvable:$true] %s50_s17 }
  0x10   :  { %32 = dma.hbm_to_vmem [thread:$0]  %s28_s12, 128, %s30_s14, [#allocation5]  }
  0x11   :  { %s2225_s6 = smov [#allocation9]   ;;  %s78_s23 = sshll.u32 %s2353_s5, 4  ;;  %s79_s23 = int_to_ptr.hbm [resolvable:$true] %s78_s23 }
  0x12   :  { %s52_s18 = sshll.u32 %s2225_s6, 4  ;;  %s2226_s24 = smov 16   ;;  %s53_s18 = int_to_ptr.vmem [resolvable:$true] %s52_s18 }
  0x13   :  { %s2227_s0 = smov 1   ;;  %s2228_s1 = smov [#allocation12]  }
  0x14   :  { %58 = dma.hbm_to_vmem [thread:$0]  %s51_s17, 80, %s53_s18, [#allocation8], %s2226_s24, %s2226_s24, %s2227_s0  }
  0x15   :  { %s80_s25 = sshll.u32 %s2228_s1, 4  ;;  %s102_s2 = sshll.u32 %s2355_s7, 4  ;;  %s81_s25 = int_to_ptr.vmem [resolvable:$true] %s80_s25  ;;  %s103_s2 = int_to_ptr.hbm [resolvable:$true] %s102_s2 }
  0x16   :  { %86 = dma.hbm_to_vmem [thread:$0]  %s79_s23, 2048, %s81_s25, [#allocation11], %s2218_s21, %s2218_s21, %s2219_s22  }
  0x17   :  { %s2229_s28 = smov [#allocation15]  }
  0x18   :  { %s104_s29 = sshll.u32 %s2229_s28, 4  ;;  %s105_s29 = int_to_ptr.vmem [resolvable:$true] %s104_s29 }
  0x19   :  { %110 = dma.hbm_to_vmem [thread:$0]  %s103_s2, 5120, %s105_s29, [#allocation14], %s2218_s21, %s2218_s21, %s2219_s22  }
  0x1a   :  { %2205 = dma.done.wait [#allocation5], 128  }
  0x1b   :  { %2206 = vsyncadd [#allocation5], 4294967168 }
  0x1c   :  { %2207 = dma.done.wait [#allocation8], 5200  }
  0x1d   :  { %2208 = vsyncadd [#allocation8], 4294962096 }
  0x1e   :  { %2209 = dma.done.wait [#allocation11], 4096  }
  0x1f   :  { %2210 = vsyncadd [#allocation11], 4294963200 }
  0x20   :  { %2211 = dma.done.wait [#allocation14], 5136  }
  0x21   :  { %2212 = vsyncadd [#allocation14], 4294962160  ;;  %v145_v0 = vld [vmem:[#allocation4] sm:$0xff]  ;;  %v1849_v3 = vld [vmem:[#allocation7 + $0x30] sm:$0xff]  ;;  %v2230_v5 = vmov 128.0   ;;  %s2232_s16 = smov [#allocation17]  }
  0x22   :  { %v1850_v1 = vld [vmem:[#allocation7 + $0x38] sm:$0xff]  ;;  %v146_v2 = vmul.f32 %v145_v0, %v145_v0  ;;  %v1848_v4 = vld [vmem:[#allocation7 + $0x28] sm:$0xff]  ;;  %1985 = vrcp.f32 %v2230_v5  ;;  %v1847_v6 = vld [vmem:[#allocation7 + $0x20] sm:$0xff]  ;;  %s1370_s17 = sshll.u32 %s2232_s16, 4  ;;  %s1372_s19 = sshll.u32 %s2358_s10, 4  ;;  %s1371_s17 = int_to_ptr.vmem [resolvable:$true] %s1370_s17  ;;  %s1373_s19 = int_to_ptr.hbm [resolvable:$true] %s1372_s19 }
  0x23   :  { %238 = vmatpush.bf16.msra.mxu0 %v1850_v1  ;;  %v1846_v7 = vld [vmem:[#allocation7 + $0x18] sm:$0xff]  ;;  %v1845_v10 = vld [vmem:[#allocation7 + $0x10] sm:$0xff]  ;;  %v1844_v12 = vld [vmem:[#allocation7 + $0x8] sm:$0xff]  ;;  %s2233_s24 = smov [#allocation16]   ;;  %s1361_s26 = sshll.u32 %s2357_s9, 4  ;;  %s1362_s26 = int_to_ptr.hbm [resolvable:$true] %s1361_s26 }
  0x24   :  { %147 = vadd.xlane.f32.xlu0 %v146_v2  ;;  %v1843_v13 = vld [vmem:[#allocation7] sm:$0xff]  ;;  %v1858_v16 = vld [vmem:[#allocation7 + $0x78] sm:$0xff]  ;;  %v1857_v17 = vld [vmem:[#allocation7 + $0x70] sm:$0xff]  ;;  %s1359_s0 = sshll.u32 %s2233_s24, 4  ;;  %s1360_s0 = int_to_ptr.vmem [resolvable:$true] %s1359_s0 }
  0x25   :  { %325 = vmatpush.bf16.msra.mxu1 %v1858_v16  ;;  %v1856_v21 = vld [vmem:[#allocation7 + $0x68] sm:$0xff]  ;;  %v1855_v23 = vld [vmem:[#allocation7 + $0x60] sm:$0xff]  ;;  %v1854_v24 = vld [vmem:[#allocation7 + $0x58] sm:$0xff] }
  0x26   :  { %v1853_v27 = vld [vmem:[#allocation7 + $0x50] sm:$0xff]  ;;  %v1852_v35 = vld [vmem:[#allocation7 + $0x48] sm:$0xff]  ;;  %v1851_v36 = vld [vmem:[#allocation7 + $0x40] sm:$0xff] }
  0x27   :  { %239 = vmatpush.bf16.msra.mxu0 %v1849_v3  ;;  %v1866_v37 = vld [vmem:[#allocation7 + $0xb8] sm:$0xff]  ;;  %v1865_v38 = vld [vmem:[#allocation7 + $0xb0] sm:$0xff]  ;;  %v1864_v39 = vld [vmem:[#allocation7 + $0xa8] sm:$0xff] }
  0x28   :  { %v1986_v8 = vpop.eup %1985  ;;  %412 = vmatpush.bf16.msra.mxu2 %v1866_v37  ;;  %v1863_v40 = vld [vmem:[#allocation7 + $0xa0] sm:$0xff]  ;;  %v1862_v41 = vld [vmem:[#allocation7 + $0x98] sm:$0xff]  ;;  %v1861_v42 = vld [vmem:[#allocation7 + $0x90] sm:$0xff] }
  0x29   :  { %v150_v9 = vmul.f32 128.0, %v1986_v8  ;;  %vm154_vm0 = vweird.f32 %v1986_v8  ;;  %326 = vmatpush.bf16.msra.mxu1 %v1857_v17  ;;  %v1974_v43 = vld [vmem:[#allocation9] ss:$0 sm:$0xff]  ;;  %v1860_v50 = vld [vmem:[#allocation7 + $0x88] sm:$0xff]  ;;  %v1874_v52 = vld [vmem:[#allocation7 + $0xf8] sm:$0xff] }
  0x2a   :  { %v1859_v51 = vld [vmem:[#allocation7 + $0x80] sm:$0xff]  ;;  %499 = vmatpush.bf16.msra.mxu3 %v1874_v52  ;;  %v1873_v53 = vld [vmem:[#allocation7 + $0xf0] sm:$0xff]  ;;  %v1872_v54 = vld [vmem:[#allocation7 + $0xe8] sm:$0xff] }
  0x2b   :  { %240 = vmatpush.bf16.msra.mxu0 %v1848_v4  ;;  %v151_v11 = vsub.f32 1.0, %v150_v9  ;;  %v1871_v55 = vld [vmem:[#allocation7 + $0xe0] sm:$0xff]  ;;  %v1870_v56 = vld [vmem:[#allocation7 + $0xd8] sm:$0xff]  ;;  %v1869_v57 = vld [vmem:[#allocation7 + $0xd0] sm:$0xff] }
  0x2c   :  { %413 = vmatpush.bf16.msra.mxu2 %v1865_v38  ;;  %v1975_v58 = vld [vmem:[#allocation9 + $0x1] ss:$0 sm:$0xff]  ;;  %v1868_v1 = vld [vmem:[#allocation7 + $0xc8] sm:$0xff]  ;;  %v1882_v3 = vld [vmem:[#allocation7 + $0x138] sm:$0xff] }
  0x2d   :  { %v152_v14 = vmul.f32 %v1986_v8, %v151_v11  ;;  %327 = vmatpush.bf16.msra.mxu1 %v1856_v21  ;;  %v1867_v2 = vld [vmem:[#allocation7 + $0xc0] sm:$0xff]  ;;  %v1881_v4 = vld [vmem:[#allocation7 + $0x130] sm:$0xff]  ;;  %v1880_v5 = vld [vmem:[#allocation7 + $0x128] sm:$0xff] }
  0x2e   :  { %500 = vmatpush.bf16.msra.mxu3 %v1873_v53  ;;  %v1976_v9 = vld [vmem:[#allocation9 + $0x2] ss:$0 sm:$0xff]  ;;  %v1876_v16 = vld [vmem:[#allocation7 + $0x108] sm:$0xff] }
  0x2f   :  { %241 = vmatpush.bf16.msra.mxu0 %v1847_v6  ;;  %v153_v15 = vadd.f32 %v1986_v8, %v152_v14  ;;  %v1879_v6 = vld [vmem:[#allocation7 + $0x120] sm:$0xff]  ;;  %v1892_v37 = vld [vmem:[#allocation10 + $0x44] sm:$0xf0]  ;;  %v1891_v38 = vld [vmem:[#allocation10 + $0x44] sm:$0xf] }
  0x30   :  { %414 = vmatpush.bf16.msra.mxu2 %v1864_v39  ;;  %v1875_v17 = vld [vmem:[#allocation7 + $0x100] sm:$0xff]  ;;  %v1586_v39 = vld [vmem:[#allocation10 + $0x48] sm:$0xf0] }
  0x31   :  { %v155_v18 = vsel %vm154_vm0, %v1986_v8, %v153_v15  ;;  %328 = vmatpush.bf16.msra.mxu1 %v1855_v23  ;;  %v1877_v8 = vld [vmem:[#allocation7 + $0x110] sm:$0xff]  ;;  %v1600_v23 = vld [vmem:[#allocation10 + $0x60] sm:$0xf] }
  0x32   :  { %501 = vmatpush.bf16.msra.mxu3 %v1872_v54  ;;  %v1977_v54 = vld [vmem:[#allocation9 + $0x3] ss:$0 sm:$0xff] }
  0x33   :  { %242 = vmatpush.bf16.msra.mxu0 %v1846_v7  ;;  %v1878_v7 = vld [vmem:[#allocation7 + $0x118] sm:$0xff] }
  0x34   :  { %415 = vmatpush.bf16.msra.mxu2 %v1863_v40 }
  0x35   :  { %329 = vmatpush.bf16.msra.mxu1 %v1854_v24  ;;  %v1896_v24 = vld [vmem:[#allocation10 + $0x64] sm:$0xf0] }
  0x36   :  { %502 = vmatpush.bf16.msra.mxu3 %v1871_v55 }
  0x37   :  { %243 = vmatpush.bf16.msra.mxu0 %v1845_v10 }
  0x38   :  { %416 = vmatpush.bf16.msra.mxu2 %v1862_v41  ;;  %v1589_v41 = vor.u32 %v1891_v38, %v1586_v39 }
  0x39   :  { %330 = vmatpush.bf16.msra.mxu1 %v1853_v27  ;;  %v1602_v27 = vld [vmem:[#allocation10 + $0x68] sm:$0xf0] }
  0x3a   :  { %503 = vmatpush.bf16.msra.mxu3 %v1870_v56 }
  0x3b   :  { %244 = vmatpush.bf16.msra.mxu0 %v1844_v12 }
  0x3c   :  { %417 = vmatpush.bf16.msra.mxu2 %v1861_v42  ;;  %v1576_v42 = vld [vmem:[#allocation10 + $0x30] sm:$0xf] }
  0x3d   :  { %331 = vmatpush.bf16.msra.mxu1 %v1852_v35 }
  0x3e   :  { %504 = vmatpush.bf16.msra.mxu3 %v1869_v57 }
  0x3f   :  { %245 = vmatpush.bf16.msra.mxu0 %v1843_v13 }
  0x40   :  { %418 = vmatpush.bf16.msra.mxu2 %v1860_v50  ;;  %v1887_v50 = vld [vmem:[#allocation10 + $0x24] sm:$0xf] }
  0x41   :  { %332 = vmatpush.bf16.msra.mxu1 %v1851_v36  ;;  %v1584_v36 = vld [vmem:[#allocation10 + $0x40] sm:$0xf] }
  0x42   :  { %505 = vmatpush.bf16.msra.mxu3 %v1868_v1  ;;  %v1585_v40 = vor.u32 %v1892_v37, %v1584_v36  ;;  %v1562_v1 = vld [vmem:[#allocation10 + $0x18] sm:$0xf0]  ;;  %v622_v36 = vld [vmem:[%s2352_s4] sm:$0x3] }
  0x43   :  { %586 = vmatpush.bf16.msrb.mxu0 %v1882_v3  ;;  %v1552_v3 = vld [vmem:[#allocation10] sm:$0xf]  ;;  %v624_v38 = vperm.slane %v622_v36, 0 }
  0x44   :  { %419 = vmatpush.bf16.msra.mxu2 %v1859_v51  ;;  %v1570_v51 = vld [vmem:[#allocation10 + $0x28] sm:$0xf0]  ;;  %v1918_v37 = vld [vmem:[#allocation15 + $0x18] sm:$0xff] }
  0x45   :  { %v1573_v53 = vor.u32 %v1887_v50, %v1570_v51  ;;  %v1915_v50 = vld [vmem:[#allocation15] sm:$0xff]  ;;  %v1930_v51 = vld [vmem:[#allocation15 + $0x78] sm:$0xff] }
  0x46   :  { %506 = vmatpush.bf16.msra.mxu3 %v1867_v2 }
  0x47   :  { %587 = vmatpush.bf16.msrb.mxu0 %v1881_v4  ;;  %v1884_v4 = vld [vmem:[#allocation10 + $0x4] sm:$0xf0] }
  0x4b   :  { %588 = vmatpush.bf16.msrb.mxu0 %v1880_v5  ;;  %v1883_v5 = vld [vmem:[#allocation10 + $0x4] sm:$0xf] }
  0x4f   :  { %589 = vmatpush.bf16.msrb.mxu0 %v1879_v6  ;;  %v1553_v6 = vor.u32 %v1884_v4, %v1552_v3 }
  0x53   :  { %590 = vmatpush.bf16.msrb.mxu0 %v1878_v7  ;;  %v1554_v7 = vld [vmem:[#allocation10 + $0x8] sm:$0xf0] }
  0x57   :  { %591 = vmatpush.bf16.msrb.mxu0 %v1877_v8  ;;  %v1557_v8 = vor.u32 %v1883_v5, %v1554_v7  ;;  %v1925_v7 = vld [vmem:[#allocation15 + $0x50] sm:$0xff] }
  0x5b   :  { %592 = vmatpush.bf16.msrb.mxu0 %v1876_v16  ;;  %v1911_v16 = vld [vmem:[#allocation12 + $0x60] sm:$0xff] }
  0x5f   :  { %593 = vmatpush.bf16.msrb.mxu0 %v1875_v17  ;;  %v1902_v17 = vld [vmem:[#allocation12 + $0x18] sm:$0xff] }
  0x97   :  { %v148_v19 = vpop.xlane.xlu0 %147 }
  0x98   :  { %v156_v20 = vmul.f32 %v155_v18, %v148_v19  ;;  %v1608_v18 = vld [vmem:[#allocation10 + $0x70] sm:$0xf]  ;;  %v1898_v19 = vld [vmem:[#allocation10 + $0x74] sm:$0xf0] }
  0x99   :  { %v1609_v21 = vor.u32 %v1898_v19, %v1608_v18  ;;  %v1910_v18 = vld [vmem:[#allocation12 + $0x58] sm:$0xff]  ;;  %v1901_v19 = vld [vmem:[#allocation12 + $0x10] sm:$0xff] }
  0x9a   :  { %v157_v22 = vadd.f32 1e-08, %v156_v20  ;;  %v1897_v20 = vld [vmem:[#allocation10 + $0x74] sm:$0xf] }
  0x9b   :  { %708 = vmatpush.bf16.msrb.mxu1 %v1609_v21  ;;  %v1900_v21 = vld [vmem:[#allocation12 + $0x8] sm:$0xff] }
  0x9c   :  { %1987 = vrsqrt.f32 %v157_v22  ;;  %vm164_vm2 = vweird.f32 %v157_v22 }
  0xa2   :  { %v1988_v25 = vpop.eup %1987 }
  0xa3   :  { %v159_v26 = vmul.f32 %v1988_v25, %v157_v22  ;;  %vm165_vm1 = vweird.f32 %v1988_v25  ;;  %v1610_v22 = vld [vmem:[#allocation10 + $0x78] sm:$0xf0] }
  0xa4   :  { %vm166_vm3 = vmor %vm164_vm2, %vm165_vm1 }
  0xa5   :  { %v160_v28 = vmul.f32 %v1988_v25, %v159_v26  ;;  %v1895_v26 = vld [vmem:[#allocation10 + $0x64] sm:$0xf] }
  0xa7   :  { %v161_v29 = vmul.f32 0.5, %v160_v28  ;;  %v1601_v28 = vor.u32 %v1896_v24, %v1600_v23 }
  0xa9   :  { %v162_v30 = vsub.f32 1.5, %v161_v29  ;;  %v1605_v29 = vor.u32 %v1895_v26, %v1602_v27  ;;  %709 = vmatpush.bf16.msrb.mxu1 %v1601_v28  ;;  %v1909_v28 = vld [vmem:[#allocation12 + $0x50] sm:$0xff] }
  0xab   :  { %v163_v31 = vmul.f32 %v1988_v25, %v162_v30  ;;  %v1592_v30 = vld [vmem:[#allocation10 + $0x50] sm:$0xf] }
  0xad   :  { %v167_v32 = vsel %vm166_vm3, %v1988_v25, %v163_v31  ;;  %v1613_v25 = vor.u32 %v1897_v20, %v1610_v22  ;;  %v1894_v31 = vld [vmem:[#allocation10 + $0x54] sm:$0xf0]  ;;  %v1978_v20 = vld [vmem:[#allocation9 + $0x4] ss:$0 sm:$0xff] }
  0xae   :  { %v168_v33 = vmul.f32 %v167_v32, %v145_v0  ;;  %v1893_v32 = vld [vmem:[#allocation10 + $0x54] sm:$0xf] }
  0xaf   :  { %721 = vmatpush.bf16.msrb.mxu2 %v1613_v25 }
  0xb0   :  { %v169_v34 = vpack.c.bf16 %v168_v33, %v168_v33  ;;  %v1594_v33 = vld [vmem:[#allocation10 + $0x58] sm:$0xf0] }
  0xb1   :  { %v1597_v35 = vor.u32 %v1893_v32, %v1594_v33  ;;  %v1922_v32 = vld [vmem:[#allocation15 + $0x38] sm:$0xff]  ;;  %v1921_v33 = vld [vmem:[#allocation15 + $0x30] sm:$0xff] }
  0xb2   :  { %246 = vmatmul.bf16.vlgmr.msra.gmra.mxu0 %v169_v34  ;;  %v1593_v34 = vor.u32 %v1894_v31, %v1592_v30  ;;  %v1908_v30 = vld [vmem:[#allocation12 + $0x48] sm:$0xff]  ;;  %v1907_v31 = vld [vmem:[#allocation12 + $0x40] sm:$0xff] }
  0xb3   :  { %722 = vmatpush.bf16.msrb.mxu2 %v1605_v29  ;;  %v1899_v29 = vld [vmem:[#allocation12] sm:$0xff] }
  0xb4   :  { %710 = vmatpush.bf16.msrb.mxu1 %v1593_v34  ;;  %v1920_v34 = vld [vmem:[#allocation15 + $0x28] sm:$0xff] }
  0xb7   :  { %723 = vmatpush.bf16.msrb.mxu2 %v1597_v35  ;;  %v1919_v35 = vld [vmem:[#allocation15 + $0x20] sm:$0xff] }
  0xb8   :  { %711 = vmatpush.bf16.msrb.mxu1 %v1585_v40  ;;  %v1917_v40 = vld [vmem:[#allocation15 + $0x10] sm:$0xff] }
  0xbb   :  { %724 = vmatpush.bf16.msrb.mxu2 %v1589_v41 }
 0x12f   :  { %v247_v44 = vpop.f32.mrf.mxu0 }
 0x130   :  { %v248_v45 = vadd.f32 %v1974_v43, %v247_v44  ;;  %v1890_v43 = vld [vmem:[#allocation10 + $0x34] sm:$0xf0]  ;;  %v1889_v44 = vld [vmem:[#allocation10 + $0x34] sm:$0xf] }
 0x132   :  { %v252_v46 = vmul.f32 0.2, %v248_v45  ;;  %vm251_vm4 = vcmp.ge.f32.partialorder %v248_v45, 0.0 }
 0x134   :  { %v253_v47 = vsel %vm251_vm4, %v248_v45, %v252_v46  ;;  %v1578_v45 = vld [vmem:[#allocation10 + $0x38] sm:$0xf0]  ;;  %v1577_v46 = vor.u32 %v1890_v43, %v1576_v42  ;;  %v625_v43 = vperm.slane %v622_v36, 1  ;;  %v1943_v36 = vld [vmem:[#allocation15 + $0xe0] sm:$0xff] }
 0x135   :  { %v254_v48 = vpack.c.bf16 %v253_v47, %v253_v47  ;;  %v1581_v47 = vor.u32 %v1889_v44, %v1578_v45 }
 0x136   :  { %712 = vmatpush.bf16.msrb.mxu1 %v1577_v46 }
 0x137   :  { %v249_v49 = vpop.f32.mrf.mxu0  ;;  %333 = vmatmul.bf16.vlgmr.msra.gmra.mxu1 %v254_v48  ;;  %v1568_v48 = vld [vmem:[#allocation10 + $0x20] sm:$0xf]  ;;  %725 = vmatpush.bf16.msrb.mxu2 %v1581_v47 }
 0x138   :  { %v1888_v49 = vld [vmem:[#allocation10 + $0x24] sm:$0xf0] }
 0x139   :  { %v1569_v52 = vor.u32 %v1888_v49, %v1568_v48  ;;  %v1916_v49 = vld [vmem:[#allocation15 + $0x8] sm:$0xff] }
 0x13b   :  { %713 = vmatpush.bf16.msrb.mxu1 %v1569_v52  ;;  %726 = vmatpush.bf16.msrb.mxu2 %v1573_v53  ;;  %v1929_v52 = vld [vmem:[#allocation15 + $0x70] sm:$0xff]  ;;  %v1928_v53 = vld [vmem:[#allocation15 + $0x68] sm:$0xff] }
 0x1b4   :  { %v334_v59 = vpop.f32.mrf.mxu1 }
 0x1b5   :  { %v335_v60 = vadd.f32 %v1975_v58, %v334_v59 }
 0x1b7   :  { %v339_v61 = vmul.f32 0.2, %v335_v60  ;;  %vm338_vm5 = vcmp.ge.f32.partialorder %v335_v60, 0.0 }
 0x1b9   :  { %v340_v62 = vsel %vm338_vm5, %v335_v60, %v339_v61  ;;  %v1560_v61 = vld [vmem:[#allocation10 + $0x10] sm:$0xf] }
 0x1ba   :  { %v341_v63 = vpack.c.bf16 %v340_v62, %v340_v62  ;;  %v1886_v62 = vld [vmem:[#allocation10 + $0x14] sm:$0xf0] }
 0x1bc   :  { %v336_v0 = vpop.f32.mrf.mxu1  ;;  %420 = vmatmul.bf16.vlgmr.msra.gmra.mxu2 %v341_v63  ;;  %v1885_v63 = vld [vmem:[#allocation10 + $0x14] sm:$0xf] }
 0x1bd   :  { %v1561_v0 = vor.u32 %v1886_v62, %v1560_v61  ;;  %v1565_v2 = vor.u32 %v1885_v63, %v1562_v1  ;;  %v2231_v63 = vmov 0.0  }
 0x1bf   :  { %714 = vmatpush.bf16.msrb.mxu1 %v1561_v0  ;;  %727 = vmatpush.bf16.msrb.mxu2 %v1565_v2 }
 0x1c3   :  { %715 = vmatpush.bf16.msrb.mxu1 %v1553_v6  ;;  %728 = vmatpush.bf16.msrb.mxu2 %v1557_v8  ;;  %v1924_v8 = vld [vmem:[#allocation15 + $0x48] sm:$0xff] }
 0x1c7   :  { %971 = vmatpush.bf16.msra.mxu1 %v1922_v32  ;;  %1058 = vmatpush.bf16.msra.mxu2 %v1930_v51  ;;  %v1931_v32 = vld [vmem:[#allocation15 + $0x80] sm:$0xff] }
 0x1c8   :  { %v1951_v51 = vld [vmem:[#allocation15 + $0x120] sm:$0xff] }
 0x1cb   :  { %972 = vmatpush.bf16.msra.mxu1 %v1921_v33  ;;  %1059 = vmatpush.bf16.msra.mxu2 %v1929_v52  ;;  %v1946_v33 = vld [vmem:[#allocation15 + $0xf8] sm:$0xff] }
 0x1cc   :  { %v1950_v52 = vld [vmem:[#allocation15 + $0x118] sm:$0xff] }
 0x1cf   :  { %973 = vmatpush.bf16.msra.mxu1 %v1920_v34  ;;  %1060 = vmatpush.bf16.msra.mxu2 %v1928_v53  ;;  %v1945_v34 = vld [vmem:[#allocation15 + $0xf0] sm:$0xff] }
 0x1d0   :  { %v1949_v53 = vld [vmem:[#allocation15 + $0x110] sm:$0xff] }
 0x1d3   :  { %974 = vmatpush.bf16.msra.mxu1 %v1919_v35  ;;  %v1944_v35 = vld [vmem:[#allocation15 + $0xe8] sm:$0xff] }
 0x1d7   :  { %975 = vmatpush.bf16.msra.mxu1 %v1918_v37  ;;  %v1942_v37 = vld [vmem:[#allocation15 + $0xd8] sm:$0xff] }
 0x1db   :  { %976 = vmatpush.bf16.msra.mxu1 %v1917_v40 }
 0x1df   :  { %977 = vmatpush.bf16.msra.mxu1 %v1916_v49  ;;  %v1953_v49 = vld [vmem:[#allocation15 + $0x130] sm:$0xff] }
 0x1e3   :  { %978 = vmatpush.bf16.msra.mxu1 %v1915_v50  ;;  %v1952_v50 = vld [vmem:[#allocation15 + $0x128] sm:$0xff] }
 0x23f   :  { %v421_v10 = vpop.f32.mrf.mxu2 }
 0x240   :  { %v422_v11 = vadd.f32 %v1976_v9, %v421_v10  ;;  %v1906_v9 = vld [vmem:[#allocation12 + $0x38] sm:$0xff] }
 0x241   :  { %v1914_v10 = vld [vmem:[#allocation12 + $0x78] sm:$0xff]  ;;  %865 = vmatpush.bf16.msrb.mxu3 %v1906_v9  ;;  %v1923_v9 = vld [vmem:[#allocation15 + $0x40] sm:$0xff] }
 0x242   :  { %v426_v12 = vmul.f32 0.2, %v422_v11  ;;  %vm425_vm6 = vcmp.ge.f32.partialorder %v422_v11, 0.0  ;;  %878 = vmatpush.bf16.msra.mxu0 %v1914_v10 }
 0x244   :  { %v427_v13 = vsel %vm425_vm6, %v422_v11, %v426_v12  ;;  %v1905_v11 = vld [vmem:[#allocation12 + $0x30] sm:$0xff] }
 0x245   :  { %v428_v14 = vpack.c.bf16 %v427_v13, %v427_v13  ;;  %v1913_v12 = vld [vmem:[#allocation12 + $0x70] sm:$0xff]  ;;  %866 = vmatpush.bf16.msrb.mxu3 %v1905_v11  ;;  %v1904_v13 = vld [vmem:[#allocation12 + $0x28] sm:$0xff] }
 0x246   :  { %879 = vmatpush.bf16.msra.mxu0 %v1913_v12 }
 0x247   :  { %v423_v15 = vpop.f32.mrf.mxu2  ;;  %507 = vmatmul.bf16.vlgmr.msra.gmra.mxu3 %v428_v14  ;;  %v1912_v14 = vld [vmem:[#allocation12 + $0x68] sm:$0xff] }
 0x248   :  { %v1903_v15 = vld [vmem:[#allocation12 + $0x20] sm:$0xff] }
 0x249   :  { %867 = vmatpush.bf16.msrb.mxu3 %v1904_v13  ;;  %v1980_v13 = vld [vmem:[%s2356_s8] ss:$0 sm:$0xff] }
 0x24a   :  { %880 = vmatpush.bf16.msra.mxu0 %v1912_v14 }
 0x24d   :  { %868 = vmatpush.bf16.msrb.mxu3 %v1903_v15 }
 0x24e   :  { %881 = vmatpush.bf16.msra.mxu0 %v1911_v16 }
 0x251   :  { %869 = vmatpush.bf16.msrb.mxu3 %v1902_v17 }
 0x252   :  { %882 = vmatpush.bf16.msra.mxu0 %v1910_v18 }
 0x255   :  { %870 = vmatpush.bf16.msrb.mxu3 %v1901_v19 }
 0x256   :  { %883 = vmatpush.bf16.msra.mxu0 %v1909_v28  ;;  %v1934_v28 = vld [vmem:[#allocation15 + $0x98] sm:$0xff] }
 0x259   :  { %871 = vmatpush.bf16.msrb.mxu3 %v1900_v21 }
 0x25a   :  { %884 = vmatpush.bf16.msra.mxu0 %v1908_v30 }
 0x25d   :  { %872 = vmatpush.bf16.msrb.mxu3 %v1899_v29  ;;  %v1933_v29 = vld [vmem:[#allocation15 + $0x90] sm:$0xff] }
 0x25e   :  { %885 = vmatpush.bf16.msra.mxu0 %v1907_v31  ;;  %v1932_v31 = vld [vmem:[#allocation15 + $0x88] sm:$0xff] }
 0x2ca   :  { %v508_v55 = vpop.f32.mrf.mxu3 }
 0x2cb   :  { %v509_v56 = vadd.f32 %v1977_v54, %v508_v55  ;;  %v1927_v54 = vld [vmem:[#allocation15 + $0x60] sm:$0xff]  ;;  %v1334_v55 = vlaneseq }
 0x2cc   :  { %1061 = vmatpush.bf16.msra.mxu2 %v1927_v54  ;;  %v1982_v54 = vld [vmem:[%s2356_s8 + $0x2] ss:$0 sm:$0xff] }
 0x2cd   :  { %vm512_vm7 = vcmp.ge.f32.partialorder %v509_v56, 0.0  ;;  %v513_v57 = vmul.f32 0.2, %v509_v56 }
 0x2cf   :  { %v514_v58 = vsel %vm512_vm7, %v509_v56, %v513_v57  ;;  %v1926_v56 = vld [vmem:[#allocation15 + $0x58] sm:$0xff]  ;;  %v1335_v57 = vshrl.u32 %v1334_v55, 7 }
 0x2d0   :  { %v515_v59 = vpack.c.bf16 %v514_v58, %v514_v58  ;;  %1062 = vmatpush.bf16.msra.mxu2 %v1926_v56  ;;  %v1979_v58 = vld [vmem:[#allocation13] ss:$0 sm:$0xff] }
 0x2d1   :  { %vm1336_vm9 = vcmp.lt.s32.totalorder %v1335_v57, 2 }
 0x2d2   :  { %v510_v60 = vpop.f32.mrf.mxu3  ;;  %594 = vmatmul.bf16.vlgmr.msrb.gmra.mxu0 %v515_v59  ;;  %v1842_v0 = vsel %vm1336_vm9, 1.0, %v2231_v63  ;;  %v1983_v63 = vld [vmem:[%s2356_s8 + $0x3] ss:$0 sm:$0xff] }
 0x2d3   :  { %1232 = vmatpush.bf16.msrb.mxu0 %v1946_v33 }
 0x2d4   :  { %1063 = vmatpush.bf16.msra.mxu2 %v1925_v7 }
 0x2d7   :  { %1233 = vmatpush.bf16.msrb.mxu0 %v1945_v34 }
 0x2d8   :  { %1064 = vmatpush.bf16.msra.mxu2 %v1924_v8 }
 0x2db   :  { %1234 = vmatpush.bf16.msrb.mxu0 %v1944_v35 }
 0x2dc   :  { %1065 = vmatpush.bf16.msra.mxu2 %v1923_v9 }
 0x2df   :  { %1235 = vmatpush.bf16.msrb.mxu0 %v1943_v36 }
 0x2e3   :  { %1236 = vmatpush.bf16.msrb.mxu0 %v1942_v37 }
 0x34f   :  { %v595_v22 = vpop.f32.mrf.mxu0 }
 0x350   :  { %v596_v23 = vadd.f32 %v1978_v20, %v595_v22 }
 0x352   :  { %vm599_vm8 = vcmp.ge.f32.partialorder %v596_v23, 0.0  ;;  %v600_v24 = vmul.f32 0.2, %v596_v23 }
 0x354   :  { %v2319_v25 = vsel %vm599_vm8, %v596_v23, %v600_v24  ;;  %v1938_v24 = vld [vmem:[#allocation15 + $0xb8] sm:$0xff] }
 0x355   :  { %v605_v26 = vpack.c.bf16 %v2319_v25, %v2319_v25  ;;  %1145 = vmatpush.bf16.msra.mxu3 %v1938_v24 }
 0x357   :  { %v597_v27 = vpop.f32.mrf.mxu0  ;;  %716 = vmatmul.bf16.vlgmr.msrb.gmra.mxu1 %v605_v26  ;;  %729 = vmatmul.bf16.vlgmr.msrb.gmra.mxu2 %v605_v26  ;;  %v1936_v26 = vld [vmem:[#allocation15 + $0xa8] sm:$0xff] }
 0x358   :  { %v1935_v27 = vld [vmem:[#allocation15 + $0xa0] sm:$0xff] }
 0x3d4   :  { %v717_v39 = vpop.f32.mrf.mxu1 }
 0x3d5   :  { %v718_v41 = vadd.f32 %v717_v39, %v624_v38  ;;  %v1941_v38 = vld [vmem:[#allocation15 + $0xd0] sm:$0xff] }
 0x3d6   :  { %v1981_v39 = vld [vmem:[%s2356_s8 + $0x1] ss:$0 sm:$0xff]  ;;  %1237 = vmatpush.bf16.msrb.mxu0 %v1941_v38 }
 0x3d7   :  { %v735_v42 = vpack.c.bf16 %v718_v41, %v718_v41 }
 0x3d9   :  { %873 = vmatmul.bf16.vlgmr.msrb.gmra.mxu3 %v735_v42 }
 0x3da   :  { %v730_v44 = vpop.f32.mrf.mxu2 }
 0x3db   :  { %v731_v45 = vadd.f32 %v730_v44, %v625_v43 }
 0x3dc   :  { %v719_v46 = vpop.f32.mrf.mxu1 }
 0x3dd   :  { %v736_v47 = vpack.c.bf16 %v731_v45, %v731_v45  ;;  %v1940_v46 = vld [vmem:[#allocation15 + $0xc8] sm:$0xff] }
 0x3de   :  { %1238 = vmatpush.bf16.msrb.mxu0 %v1940_v46 }
 0x3df   :  { %886 = vmatmul.bf16.vlgmr.msra.gmra.mxu0 %v736_v47  ;;  %v1939_v47 = vld [vmem:[#allocation15 + $0xc0] sm:$0xff] }
 0x3e2   :  { %v732_v48 = vpop.f32.mrf.mxu2  ;;  %1239 = vmatpush.bf16.msrb.mxu0 %v1939_v47 }
 0x3e3   :  { %v1954_v48 = vld [vmem:[#allocation15 + $0x138] sm:$0xff] }
 0x3e4   :  { %1319 = vmatpush.bf16.msrb.mxu1 %v1954_v48 }
 0x3e8   :  { %1320 = vmatpush.bf16.msrb.mxu1 %v1953_v49 }
 0x3ec   :  { %1321 = vmatpush.bf16.msrb.mxu1 %v1952_v50 }
 0x3f0   :  { %1322 = vmatpush.bf16.msrb.mxu1 %v1951_v51 }
 0x3f4   :  { %1323 = vmatpush.bf16.msrb.mxu1 %v1950_v52 }
 0x3f8   :  { %1324 = vmatpush.bf16.msrb.mxu1 %v1949_v53 }
 0x45c   :  { %v874_v59 = vpop.f32.mrf.mxu3  ;;  %v887_v60 = vpop.f32.mrf.mxu0 }
 0x45d   :  { %v888_v61 = vadd.f32 %v887_v60, %v874_v59 }
 0x45f   :  { %v901_v62 = vadd.f32 %v1979_v58, %v888_v61  ;;  %v1948_v61 = vld [vmem:[#allocation15 + $0x108] sm:$0xff] }
 0x460   :  { %1325 = vmatpush.bf16.msrb.mxu1 %v1948_v61 }
 0x461   :  { %v902_v1 = vpack.c.bf16 %v901_v62, %v901_v62  ;;  %v1339_v2 = vsub.f32 %v901_v62, %v2319_v25  ;;  %v1937_v25 = vld [vmem:[#allocation15 + $0xb0] sm:$0xff]  ;;  %v1947_v62 = vld [vmem:[#allocation15 + $0x100] sm:$0xff] }
 0x462   :  { %1146 = vmatpush.bf16.msra.mxu3 %v1937_v25 }
 0x463   :  { %979 = vmatmul.bf16.vlgmr.msra.gmra.mxu1 %v902_v1  ;;  %v1340_v3 = vmul.f32 %v1842_v0, %v1339_v2 }
 0x464   :  { %v876_v4 = vpop.f32.mrf.mxu3  ;;  %v889_v5 = vpop.f32.mrf.mxu0  ;;  %1326 = vmatpush.bf16.msrb.mxu1 %v1947_v62 }
 0x465   :  { %v1341_v6 = vmul.f32 %v1340_v3, %v1340_v3 }
 0x466   :  { %1147 = vmatpush.bf16.msra.mxu3 %v1936_v26 }
 0x467   :  { %1342 = vadd.xlane.f32.xlu0 %v1341_v6  ;;  %v1984_v6 = vld [vmem:[%s2356_s8 + $0x4] ss:$0 sm:$0xff] }
 0x46a   :  { %1148 = vmatpush.bf16.msra.mxu3 %v1935_v27 }
 0x46e   :  { %1149 = vmatpush.bf16.msra.mxu3 %v1934_v28 }
 0x472   :  { %1150 = vmatpush.bf16.msra.mxu3 %v1933_v29 }
 0x476   :  { %1151 = vmatpush.bf16.msra.mxu3 %v1932_v31 }
 0x47a   :  { %1152 = vmatpush.bf16.msra.mxu3 %v1931_v32 }
 0x4da   :  { %v1343_v10 = vpop.xlane.xlu0 %1342 }
 0x4db   :  { %v1344_v11 = vrot.slane %v1343_v10, 4 }
 0x4dd   :  { %v1345_v12 = vadd.f32 %v1344_v11, %v1343_v10 }
 0x4df   :  { %v1346_v14 = vrot.slane %v1345_v12, 2 }
 0x4e0   :  { %v980_v15 = vpop.f32.mrf.mxu1 }
 0x4e1   :  { %v981_v16 = vadd.f32 %v1980_v13, %v980_v15  ;;  %v1347_v17 = vadd.f32 %v1346_v14, %v1345_v12 }
 0x4e3   :  { %vm984_vm10 = vcmp.ge.f32.partialorder %v981_v16, 0.0  ;;  %v985_v18 = vmul.f32 0.2, %v981_v16  ;;  %v1348_v19 = vrot.slane %v1347_v17, 1 }
 0x4e5   :  { %v986_v20 = vsel %vm984_vm10, %v981_v16, %v985_v18  ;;  %v1349_v21 = vadd.f32 %v1348_v19, %v1347_v17 }
 0x4e6   :  { %v987_v22 = vpack.c.bf16 %v986_v20, %v986_v20 }
 0x4e7   :  { %1955 = vpush %v1349_v21 }
 0x4e8   :  { %v982_v23 = vpop.f32.mrf.mxu1  ;;  %1066 = vmatmul.bf16.vlgmr.msra.gmra.mxu2 %v987_v22 }
 0x518   :  { %s1956_s22 = spop %1955 }
 0x519   :  { %s1351_s3 = smul.f32 0.00390625, %s1956_s22 }
 0x51b   :  { %v1352_v30 = vstv %s1351_s3 }
 0x51c   :  { %1353 = vst [vmem:[#allocation17] sm:$0x1] %v1352_v30 }
 0x51d   :  { %1375 = dma.vmem_to_hbm [thread:$0]  %s1371_s17, 16, %s1373_s19, [#allocation18]  }
 0x56b   :  { %v1067_v40 = vpop.f32.mrf.mxu2 }
 0x56c   :  { %v1068_v41 = vadd.f32 %v1981_v39, %v1067_v40 }
 0x56e   :  { %vm1071_vm11 = vcmp.ge.f32.partialorder %v1068_v41, 0.0  ;;  %v1072_v42 = vmul.f32 0.2, %v1068_v41 }
 0x570   :  { %v1073_v43 = vsel %vm1071_vm11, %v1068_v41, %v1072_v42 }
 0x571   :  { %v1074_v44 = vpack.c.bf16 %v1073_v43, %v1073_v43 }
 0x573   :  { %v1069_v45 = vpop.f32.mrf.mxu2  ;;  %1153 = vmatmul.bf16.vlgmr.msra.gmra.mxu3 %v1074_v44 }
 0x5f6   :  { %v1154_v55 = vpop.f32.mrf.mxu3 }
 0x5f7   :  { %v1155_v56 = vadd.f32 %v1982_v54, %v1154_v55 }
 0x5f9   :  { %vm1158_vm12 = vcmp.ge.f32.partialorder %v1155_v56, 0.0  ;;  %v1159_v57 = vmul.f32 0.2, %v1155_v56 }
 0x5fb   :  { %v1160_v58 = vsel %vm1158_vm12, %v1155_v56, %v1159_v57 }
 0x5fc   :  { %v1161_v59 = vpack.c.bf16 %v1160_v58, %v1160_v58 }
 0x5fe   :  { %v1156_v60 = vpop.f32.mrf.mxu3  ;;  %1240 = vmatmul.bf16.vlgmr.msrb.gmra.mxu0 %v1161_v59 }
 0x67b   :  { %v1241_v0 = vpop.f32.mrf.mxu0 }
 0x67c   :  { %v1242_v1 = vadd.f32 %v1983_v63, %v1241_v0 }
 0x67e   :  { %vm1245_vm13 = vcmp.ge.f32.partialorder %v1242_v1, 0.0  ;;  %v1246_v2 = vmul.f32 0.2, %v1242_v1 }
 0x680   :  { %v1247_v3 = vsel %vm1245_vm13, %v1242_v1, %v1246_v2 }
 0x681   :  { %v1248_v4 = vpack.c.bf16 %v1247_v3, %v1247_v3 }
 0x683   :  { %v1243_v5 = vpop.f32.mrf.mxu0  ;;  %1327 = vmatmul.bf16.vlgmr.msrb.gmra.mxu1 %v1248_v4 }
 0x700   :  { %v1328_v7 = vpop.f32.mrf.mxu1 }
 0x701   :  { %v1329_v8 = vadd.f32 %v1984_v6, %v1328_v7 }
 0x703   :  { %1332 = vst [vmem:[#allocation16] sm:$0xff] %v1329_v8 }
 0x704   :  { %1364 = dma.vmem_to_hbm [thread:$0]  %s1360_s0, 128, %s1362_s26, [#allocation6]  }
 0x708   :  { %v1330_v9 = vpop.f32.mrf.mxu1 }
 0x709   :  { %2213 = dma.done.wait [#allocation6], 128  }
 0x70a   :  { %2214 = vsyncadd [#allocation6], 4294967168 }
 0x70b   :  { %2215 = dma.done.wait [#allocation18], 16  }
 0x70c   :  { %2216 = vsyncadd [#allocation18], 4294967280 }
 0x70d   :  { %1384 = vsyncpa [#allocation5], 1 }
 0x70e   :  { %1385 = vsyncpa [#allocation8], 1 }
 0x70f   :  { %1386 = vsyncpa [#allocation11], 1 }
 0x710   :  { %1387 = vsyncpa [#allocation14], 1 }
 0x711   :  { %1388 = vsyncpa [#allocation6], 1 }
 0x712   :  { %1389 = vsyncpa [#allocation18], 1 }

</bundles_post_ra>
